<compile_context>
chip_gen: v7x
topology: tpu7x:2x2x1
jax: 0.10.0
libtpu: 0.0.40
codegen_flags: <defaults>
</compile_context>

<pallas_src>
import jax
import jax.numpy as jnp
from jax.experimental import pallas as pl
from jax.experimental.pallas import tpu as pltpu


def _fixed_patch_kernel(x_ref, patch_ref, o_ref):
    # x_ref / o_ref: (TB, C, Pb, W) strip covering the top Pb rows of TB images.
    # patch_ref:     (1, C, Ph, Pw) learned patch (constant block, stays resident).
    x = x_ref[...]
    p = patch_ref[...].astype(x.dtype)
    pb, w = x.shape[-2], x.shape[-1]
    ph, pw = p.shape[-2], p.shape[-1]
    # Zero-pad the patch only to the strip extent (Pb x W), not the full image,
    # then add with broadcasting over the batch-tile dimension (VPU work is
    # slack; DMA is the bottleneck).
    p_strip = jax.lax.pad(
        p,
        jnp.zeros((), dtype=x.dtype),
        ((0, 0, 0), (0, 0, 0), (0, pb - ph, 0), (0, w - pw, 0)),
    )
    o_ref[...] = x + p_strip


def _pick_batch_tile(batch, bytes_per_image_strip, target_bytes=2 << 20):
    """Largest divisor of `batch` whose strip-block fits in `target_bytes`,
    preferring >=2 grid steps so both TensorCores can be used on v7x."""
    divisors = [d for d in range(1, batch + 1) if batch % d == 0]
    fitting = [d for d in divisors if d * bytes_per_image_strip <= target_bytes]
    if not fitting:
        return 1
    tb = max(fitting)
    if batch // tb < 2:
        two_step = [d for d in fitting if batch // d >= 2]
        if two_step:
            tb = max(two_step)
    return tb


def fixed_patch_prompter(x, patch):
    """x: (B, C, H, W); patch: (1, C, Ph, Pw). Returns x + top-left patch.

    The returned array aliases x's buffer; donate x at the jit boundary to
    avoid XLA inserting a defensive copy.
    """
    B, C, H, W = x.shape
    _, Cp, Ph, Pw = patch.shape
    assert Cp == C and Ph <= H and Pw <= W

    # Height of the processed strip: round Ph up to the 8-sublane multiple
    # (BlockSpec constraint), clamped to the full image height.
    Pb = min(H, ((Ph + 7) // 8) * 8)

    itemsize = jnp.dtype(x.dtype).itemsize
    strip_bytes = C * Pb * W * itemsize
    tb = _pick_batch_tile(B, strip_bytes)
    grid = (B // tb,)

    return pl.pallas_call(
        _fixed_patch_kernel,
        out_shape=jax.ShapeDtypeStruct((B, C, H, W), x.dtype),
        grid=grid,
        in_specs=[
            # Only the top-Pb-row strip of each image is ever read.
            pl.BlockSpec((tb, C, Pb, W), lambda b: (b, 0, 0, 0)),
            # Patch: constant block index -> stays resident across the grid.
            pl.BlockSpec((1, C, Ph, Pw), lambda b: (0, 0, 0, 0)),
        ],
        # Only the top-Pb-row strip is written; the rest of the output keeps
        # x's data because the output buffer aliases the input buffer.
        out_specs=pl.BlockSpec((tb, C, Pb, W), lambda b: (b, 0, 0, 0)),
        input_output_aliases={0: 0},
        compiler_params=pltpu.CompilerParams(
            dimension_semantics=("parallel",),
        ),
    )(x, patch)


if __name__ == "__main__":
    # Small shapes consistent with the module: image_size=16, prompt_size=8,
    # 3 channels (the module hard-codes 3), batch=2.
    B, C, H, W = 2, 3, 16, 16
    P = 8

    key = jax.random.PRNGKey(0)
    kx, kp = jax.random.split(key)
    x = jax.random.normal(kx, (B, C, H, W), dtype=jnp.float32)
    # Deterministic init of the learned parameter (torch.randn equivalent).
    patch = jax.random.normal(kp, (1, C, P, P), dtype=jnp.float32)

    # Pure-JAX reference — computed BEFORE the kernel call since x is donated.
    ref = x.at[:, :, :P, :P].add(patch)

    fwd = jax.jit(fixed_patch_prompter, donate_argnums=(0,))
    out = jax.block_until_ready(fwd(x, patch))

    assert out.shape == ref.shape and out.dtype == ref.dtype
    assert jnp.allclose(out, ref, atol=1e-6), "mismatch vs reference"

    print("KERNEL_OK")
</pallas_src>

<mosaic_0001>
module attributes {stable_mosaic.version = 11 : i64} {
  func.func @_fixed_patch_kernel(%arg0: i32, %arg1: memref<1x3x8x16xf32, #tpu.memory_space<vmem>>, %arg2: memref<1x3x8x8xf32, #tpu.memory_space<vmem>>, %arg3: memref<1x3x8x16xf32, #tpu.memory_space<vmem>>) attributes {dimension_semantics = [#tpu.dimension_semantics<parallel>], iteration_bounds = array<i64: 2>, scalar_prefetch = 0 : i64, scratch_operands = 0 : i64, tpu.core_type = #tpu.core_type<tc>, window_params = [{transform_indices = @transform_0, window_bounds = array<i64: 1, 3, 8, 16>}, {pipeline_mode = #tpu.pipeline_mode<synchronous>, transform_indices = @transform_1, window_bounds = array<i64: 1, 3, 8, 8>}, {transform_indices = @transform_2, window_bounds = array<i64: 1, 3, 8, 16>}]} {
    %c0 = arith.constant 0 : index
    %c0_0 = arith.constant 0 : index
    %c0_1 = arith.constant 0 : index
    %c0_2 = arith.constant 0 : index
    %0 = vector.load %arg1[%c0, %c0_0, %c0_1, %c0_2] : memref<1x3x8x16xf32, #tpu.memory_space<vmem>>, vector<1x3x8x16xf32>
    %c0_3 = arith.constant 0 : index
    %c0_4 = arith.constant 0 : index
    %c0_5 = arith.constant 0 : index
    %c0_6 = arith.constant 0 : index
    %1 = vector.load %arg2[%c0_3, %c0_4, %c0_5, %c0_6] : memref<1x3x8x8xf32, #tpu.memory_space<vmem>>, vector<1x3x8x8xf32>
    %cst = arith.constant 0.000000e+00 : f32
    %2 = vector.broadcast %cst : f32 to vector<1x3x8x8xf32>
    %3 = tpu.concatenate %1, %2 in 3 : vector<1x3x8x8xf32>, vector<1x3x8x8xf32> -> vector<1x3x8x16xf32>
    %4 = arith.addf %0, %3 : vector<1x3x8x16xf32>
    %c0_7 = arith.constant 0 : index
    %c0_8 = arith.constant 0 : index
    %c0_9 = arith.constant 0 : index
    %c0_10 = arith.constant 0 : index
    %5 = vector.load %arg3[%c0_7, %c0_8, %c0_9, %c0_10] : memref<1x3x8x16xf32, #tpu.memory_space<vmem>>, vector<1x3x8x16xf32>
    tpu.vector_store %arg3[%c0_7, %c0_8, %c0_9, %c0_10], %4 {strides = array<i32>} : memref<1x3x8x16xf32, #tpu.memory_space<vmem>>, vector<1x3x8x16xf32>,
    return
  }
  func.func @transform_0(%arg0: i32) -> (i32, i32, i32, i32) {
    %c0_i32 = arith.constant 0 : i32
    %c0_i32_0 = arith.constant 0 : i32
    %c0_i32_1 = arith.constant 0 : i32
    %c0_i32_2 = arith.constant 0 : i32
    return %arg0, %c0_i32, %c0_i32_0, %c0_i32_1 : i32, i32, i32, i32
  }
  func.func @transform_1(%arg0: i32) -> (i32, i32, i32, i32) {
    %c0_i32 = arith.constant 0 : i32
    %c0_i32_0 = arith.constant 0 : i32
    %c0_i32_1 = arith.constant 0 : i32
    %c0_i32_2 = arith.constant 0 : i32
    %c0_i32_3 = arith.constant 0 : i32
    return %c0_i32, %c0_i32_0, %c0_i32_1, %c0_i32_2 : i32, i32, i32, i32
  }
  func.func @transform_2(%arg0: i32) -> (i32, i32, i32, i32) {
    %c0_i32 = arith.constant 0 : i32
    %c0_i32_0 = arith.constant 0 : i32
    %c0_i32_1 = arith.constant 0 : i32
    %c0_i32_2 = arith.constant 0 : i32
    return %arg0, %c0_i32, %c0_i32_0, %c0_i32_1 : i32, i32, i32, i32
  }
}

</mosaic_0001>

<bundles_post_ra>
// kernel: fixed_patch_prompter.1
= control target key start
LH: loop header
LB: loop body
LE: loop exit
PB: predicated region body
PF: predicated region fallthrough
CT: control target
= control target key end

     0   :  { %7 = vsyncpa [#allocation3], 0  ;;  %s727_s0 = inlined_call_operand.hbm [shape: f32[2,3,16,16], index: 0, kind: input, shape index: {}, may-alias: {0,2}]   ;;  %s728_s1 = inlined_call_operand.hbm [shape: f32[1,3,8,8], index: 1, kind: input, shape index: {}]   ;;  %s729_s2 = inlined_call_operand.hbm [shape: f32[2,3,16,16], index: 2, kind: output, shape index: {}, may-alias: {0,2}]  }
   0x1   :  { %9 = vsyncpa [#allocation3 + $0x1], 0 }
   0x2   :  { %10 = vsyncpa [#allocation6], 0 }
   0x3   :  { %11 = vsyncpa [#allocation4], 0 }
   0x4   :  { %13 = vsyncpa [#allocation4 + $0x1], 0  ;;  %s522_s9 = smov 0   ;;  %s524_s10 = smov 0  }
   0x5   :  { %s526_s11 = smov 0   ;;  %s528_s12 = smov 0  }
   0x6 LB: > { %s543_s13 = sadd.s32 4294967295, %s496_s12   ;;  %s291_s14 = sadd.s32 4294967294, %s496_s12   ;;  %s496_s12 = sphi %s528_s12, %s753_s12   ;;  %s492_s11 = sphi %s526_s11, %s752_s11   ;;  %s488_s10 = sphi %s524_s10, %s751_s10   ;;  %s484_s9 = sphi %s522_s9, %s750_s9  }
   0x7   : > { %s547_s15 = sadd.s32 1, %s496_s12   ;;  %s26_s16 = sadd.s32 1, %s492_s11 }
   0x8   : > { %s23_s17 = ssub.s32 %s496_s12, %s547_s15  ;;  %p33_p0 = scmp.ne.s32.totalorder %s492_s11, %s488_s10 }
   0x9   : > { %p24_p1 = scmp.eq.s32.totalorder %s23_s17, 0  ;;  %p34_p2 = scmp.eq.s32.totalorder %s496_s12, 0 }
   0xa   : > { %p39_p3 = scmp.ne.s32.totalorder %s488_s10, %s484_s9  ;;  %p730_p4 = scmp.eq.s32.totalorder %s543_s13, 0 }
   0xb   : > { %s559_s18 = scalar_select %p24_p1, %s492_s11, %s26_s16  }
   0xc   : > { %p561_p5 = por %p34_p2, %p33_p0  ;;  %p567_p6 = por %p730_p4, %p39_p3 }
   0xd   : > { %p84_p7 = scmp.eq.s32.totalorder %s543_s13, 1  ;;  %p90_p8 = scmp.eq.s32.totalorder %s291_s14, 1 }
   0xe   : > { %s734_s19 = scalar_select %p561_p5, 1, 0 }
   0xf   : > { %s735_s20 = scalar_select %p567_p6, 1, 0 }
  0x10   : > { %p292_p9 = scmp.ge.s32.totalorder %s496_s12, 1  ;;  %p97_p10 = scmp.lt.s32.totalorder %s496_s12, 3 }
  0x11   : > { %p574_p11 = por %p84_p7, %p33_p0  ;;  %p578_p12 = por %p90_p8, %p39_p3 }
  0x12   : > { %p582_p13 = pnand %p292_p9, %p97_p10  ;;  %s498_s24 = smov [#allocation5]  }
  0x13   : > { %s736_s21 = scalar_select %p574_p11, 1, 0 }
  0x14   : > { %s737_s22 = scalar_select %p578_p12, 1, 0 }
  0x15   : > { %s738_s23 = scalar_select %p582_p13, 1, 0 }
  0x16   : > { %p313_p1 = pneg %p582_p13  ;;  %s109_s25 = sshll.u32 %s498_s24, 4  ;;  %s110_s25 = int_to_ptr.vmem [resolvable:$true] %s109_s25 }
  0x17   : > { %s123_s27 = sand.u32 1, %s492_s11   ;;  %s368_s30 = scalar_lea.hbm %s728_s1, 384 }
  0x18   : > { %p590_p2 = pnand %p313_p1, %p730_p4  ;;  %p369_p7 = scmp.ne.s32.totalorder %s728_s1, %s368_s30 }
  0x19   : > { %p375_p1 = scmp.lt.u32.totalorder %s368_s30, %s728_s1 }
  0x1a   : > { %p370_p8 = pneg %p590_p2 }
  0x1c   : > { %p371_p9 = pnand %p370_p8, %p369_p7 }
  0x1e   : > { %p372_p10 = pneg %p371_p9 }
  0x20   : > { %p377_p4 = pnand %p375_p1, %p372_p10 }
  0x22   : > { %380 = shalt.err (!%p377_p4)
}
  0x23   : > { %s381_s7 = scalar_lea.vmem %s110_s25, 384  ;;  %p389_p11 = scmp.lt.s32.totalorder %s110_s25, %s110_s25 }
  0x24   : > { %p382_p0 = scmp.ne.s32.totalorder %s110_s25, %s381_s7  ;;  %p390_p6 = scmp.lt.s32.totalorder %s381_s7, %s381_s7 }
  0x26   : > { %p384_p3 = pnand %p382_p0, %p370_p8  ;;  %p391_p13 = por %p390_p6, %p389_p11 }
  0x28   : > { %p385_p12 = pneg %p384_p3 }
  0x2a   : > { %p392_p5 = pnand %p391_p13, %p385_p12 }
  0x2c   : > { %395 = shalt.err (!%p392_p5)
}
  0x2d   : > { %s499_s8 = smov 128   ;;  %s500_s14 = smov 8  }
  0x2e   : > { %316 = dma.hbm_to_vmem [thread:$0]  (!%p590_p2), %s728_s1, 384, %s110_s25, [#allocation6], %s499_s8, %s499_s8, %s500_s14  }
  0x2f   : > { %p740_p4 = scmp.ne.s32.totalorder %s734_s19, 0  ;;  %p741_p0 = scmp.lt.s32.totalorder %s496_s12, 2 }
  0x30   : > { %s301_s28 = smul.u32 24, %s123_s27  ;;  %s632_s4 = scalar_lea.sflag [#allocation3], %s123_s27 }
  0x31   : > { %p620_p3 = pnand %p741_p0, %p740_p4  ;;  %s302_s29 = smul.u32 768, %s496_s12 }
  0x32   : > { %s127_s25 = scalar_lea.vmem [#allocation2], %s301_s28  ;;  %s401_s16 = scalar_lea.hbm %s727_s0, 1536 }
  0x33   : > { %s628_s26 = scalar_lea.hbm %s727_s0, %s302_s29  ;;  %s134_s19 = sshll.u32 %s127_s25, 4  ;;  %s630_s19 = int_to_ptr.vmem [resolvable:$true] %s134_s19 }
  0x34   : > { %s396_s5 = scalar_lea.hbm %s628_s26, 384  ;;  %p398_p6 = pneg %p620_p3 }
  0x35   : > { %p397_p5 = scmp.ne.s32.totalorder %s628_s26, %s396_s5  ;;  %p402_p13 = scmp.lt.u32.totalorder %s628_s26, %s727_s0 }
  0x36   : > { %p403_p2 = scmp.lt.u32.totalorder %s401_s16, %s396_s5  ;;  %p405_p8 = scmp.lt.u32.totalorder %s396_s5, %s628_s26 }
  0x37   : > { %p399_p11 = pnand %p398_p6, %p397_p5 }
  0x38   : > { %p404_p7 = por %p403_p2, %p402_p13 }
  0x39   : > { %p400_p12 = pneg %p399_p11 }
  0x3a   : > { %p406_p9 = por %p405_p8, %p404_p7 }
  0x3c   : > { %p407_p10 = pnand %p406_p9, %p400_p12 }
  0x3e   : > { %410 = shalt.err (!%p407_p10)
}
  0x3f   : > { %s411_s27 = scalar_lea.vmem %s630_s19, 384  ;;  %s501_s28 = smov [#allocation2]  }
  0x40   : > { %p412_p1 = scmp.ne.s32.totalorder %s630_s19, %s411_s27  ;;  %s416_s30 = sshll.u32 %s501_s28, 4  ;;  %s417_s30 = int_to_ptr.vmem [resolvable:$false] %s416_s30 }
  0x41   : > { %s418_s3 = scalar_lea.vmem %s417_s30, 768  ;;  %p419_p5 = scmp.lt.s32.totalorder %s630_s19, %s417_s30 }
  0x42   : > { %p414_p4 = pnand %p412_p1, %p398_p6  ;;  %p420_p11 = scmp.lt.s32.totalorder %s418_s3, %s411_s27 }
  0x44   : > { %p415_p0 = pneg %p414_p4  ;;  %p421_p13 = por %p420_p11, %p419_p5 }
  0x46   : > { %p422_p2 = pnand %p421_p13, %p415_p0 }
  0x48   : > { %425 = shalt.err (!%p422_p2)
}
  0x49   : > { %s502_s25 = smov 256   ;;  %p743_p6 = scmp.ne.s32.totalorder %s738_s23, 0 }
  0x4a   : > { %320 = dma.hbm_to_vmem [thread:$0]  (!%p620_p3), %s628_s26, 384, %s630_s19, %s632_s4, %s502_s25, %s499_s8, %s500_s14  }
  0x4b   : > { %146 = sbr.rel (%p743_p6) target bundleno = 114 (0x72), region = 28  ;;  %s665_s5 = sand.u32 (!%p743_p6), 1, %s488_s10  }
  0x4c   : > { %s303_s6 = smul.u32 (!%p743_p6), 24, %s665_s5  ;;  %s149_s7 = scalar_lea.sflag (!%p743_p6), [#allocation3], %s665_s5 }
  0x4d   : > { %p744_p12 = scmp.ne.s32.totalorder (!%p743_p6), %s735_s20, 0 }
  0x4e   : > { %s152_s16 = scalar_lea.vmem (!%p743_p6), [#allocation2], %s303_s6 }
  0x52   : > { %471 = dma.done.wait (%p744_p12), %s149_s7, 384  }
  0x53   : > { %473 = vsyncadd (%p744_p12), %s149_s7, 4294966912  ;;  %p745_p7 = scmp.eq.s32.totalorder %s543_s13, 0 }
  0x55   : > { %475 = dma.done.wait (%p745_p7), [#allocation6], 384   ;;  %p746_p3 = pmov %p745_p7 }
  0x56   : > { %vm183_vm0 = vcmask 64512   ;;  %s176_s23 = scalar_lea.vmem [#allocation7], %s303_s6  ;;  %s304_s14 = smul.u32 768, %s543_s13  ;;  %v177_v0 = vld [vmem:[%s152_s16] sm:$0xff]  ;;  %v180_v1 = vld [vmem:[#allocation5] sm:$0xff]  ;;  %v178_v2 = vld [vmem:[%s152_s16 + $0x8] sm:$0xff] }
  0x57   : > { %477 = vsyncadd (%p746_p3), [#allocation6], 4294966912  ;;  %s208_s8 = sshll.u32 %s176_s23, 4  ;;  %v184_v3 = vsel %vm183_vm0, %v180_v1, 0.0  ;;  %vm190_vm1 = vcmask 130048   ;;  %v181_v4 = vld [vmem:[#allocation5 + $0x8] sm:$0xff]  ;;  %s678_s8 = int_to_ptr.vmem [resolvable:$true] %s208_s8 }
  0x58   : > { %v179_v5 = vld [vmem:[%s152_s16 + $0x10] sm:$0xff]  ;;  %v182_v6 = vld [vmem:[#allocation5 + $0x10] sm:$0xff]  ;;  %v187_v7 = vadd.f32 %v184_v3, %v177_v0  ;;  %v185_v8 = vsel %vm183_vm0, %v181_v4, 0.0  ;;  %s683_s13 = scalar_lea.hbm %s729_s2, %s304_s14  ;;  %s195_s26 = scalar_lea.sflag [#allocation4], %s665_s5 }
  0x59   : > { %v186_v9 = vsel %vm183_vm0, %v182_v6, 0.0  ;;  %v188_v10 = vadd.f32 %v185_v8, %v178_v2  ;;  %s426_s19 = scalar_lea.vmem %s678_s8, 384  ;;  %p747_p9 = scmp.ne.s32.totalorder %s736_s21, 0 }
  0x5a   : > { %v189_v11 = vadd.f32 %v186_v9, %v179_v5  ;;  %191 = vst.msk [vmem:[%s176_s23] sm:$0xff] %vm190_vm1, %v187_v7  ;;  %p427_p8 = scmp.ne.s32.totalorder %s678_s8, %s426_s19  ;;  %s503_s4 = smov [#allocation7]  }
  0x5b   : > { %192 = vst.msk [vmem:[%s176_s23 + $0x8] sm:$0xff] %vm190_vm1, %v188_v10  ;;  %s430_s17 = sshll.u32 %s503_s4, 4  ;;  %s431_s17 = int_to_ptr.vmem [resolvable:$false] %s430_s17 }
  0x5c   : > { %193 = vst.msk [vmem:[%s176_s23 + $0x10] sm:$0xff] %vm190_vm1, %v189_v11  ;;  %p428_p10 = pnand %p427_p8, %p747_p9  ;;  %s432_s29 = scalar_lea.vmem %s431_s17, 768 }
  0x5d   : > { %p433_p4 = scmp.lt.s32.totalorder %s678_s8, %s431_s17  ;;  %p434_p0 = scmp.lt.s32.totalorder %s432_s29, %s426_s19 }
  0x5e   : > { %p429_p1 = pneg %p428_p10 }
  0x5f   : > { %p435_p5 = por %p434_p0, %p433_p4 }
  0x61   : > { %p436_p11 = pnand %p435_p5, %p429_p1 }
  0x63   : > { %439 = shalt.err (!%p436_p11)
}
  0x64   : > { %s440_s27 = scalar_lea.hbm %s683_s13, 384  ;;  %s444_s3 = scalar_lea.hbm %s729_s2, 1536 }
  0x65   : > { %p441_p13 = scmp.ne.s32.totalorder %s683_s13, %s440_s27  ;;  %p445_p12 = scmp.lt.u32.totalorder %s683_s13, %s729_s2 }
  0x66   : > { %p446_p7 = scmp.lt.u32.totalorder %s444_s3, %s440_s27  ;;  %p448_p8 = scmp.lt.u32.totalorder %s440_s27, %s683_s13 }
  0x67   : > { %p442_p2 = pnand %p441_p13, %p747_p9 }
  0x68   : > { %p447_p3 = por %p446_p7, %p445_p12 }
  0x69   : > { %p443_p6 = pneg %p442_p2 }
  0x6a   : > { %p449_p10 = por %p448_p8, %p447_p3 }
  0x6c   : > { %p450_p1 = pnand %p449_p10, %p443_p6 }
  0x6e   : > { %453 = shalt.err (!%p450_p1)
}
  0x6f   : > { %s504_s7 = smov 128   ;;  %s505_s16 = smov 256  }
  0x70   : > { %s506_s23 = smov 8  }
  0x71   : > { %311 = dma.vmem_to_hbm [thread:$0]  (%p747_p9), %s678_s8, 384, %s683_s13, %s195_s26, %s504_s7, %s505_s16, %s506_s23  }
  0x72 PF: > { %s223_s14 = sand.u32 1, %s484_s9   ;;  %p748_p4 = scmp.ne.s32.totalorder %s737_s22, 0 }
  0x73   : > { %p749_p0 = scmp.ge.s32.totalorder %s496_s12, 2  ;;  %s224_s20 = scalar_lea.sflag [#allocation4], %s223_s14 }
  0x75   : > { %p322_p5 = pnand %p749_p0, %p748_p4 }
  0x77   : > { %479 = dma.done.wait (!%p322_p5), %s224_s20, 384  }
  0x78   : > { %481 = vsyncadd (!%p322_p5), %s224_s20, 4294966912  ;;  %p16_p11 = scmp.ge.s32.totalorder %s547_s15, 4   ;;  %s750_s9 = smov %s488_s10 }
  0x79   : > { %s751_s10 = smov %s492_s11  ;;  %s752_s11 = smov %s559_s18 }
  0x7a   : > { %s753_s12 = smov %s547_s15  ;;  %18 = sbr.rel (!%p16_p11) target bundleno = 6 (0x6), region = 77 }
  0x81   :  { %229 = vsyncpa [#allocation3], 1 }
  0x82   :  { %231 = vsyncpa [#allocation3 + $0x1], 1 }
  0x83   :  { %232 = vsyncpa [#allocation6], 1 }
  0x84   :  { %233 = vsyncpa [#allocation4], 1 }
  0x85   :  { %235 = vsyncpa [#allocation4 + $0x1], 1 }

</bundles_post_ra>
